<compile_context>
chip_gen: v6e
topology: v6e:2x2x1
jax: 0.10.0
libtpu: 0.0.40
codegen_flags: <defaults>
</compile_context>

<pallas_src>
import functools

import jax
import jax.numpy as jnp
import numpy as np
from jax.experimental import pallas as pl
from jax.experimental.pallas import tpu as pltpu


def _torch_style_pad(x, size=1):
    """Mirrors pad(x, 1) from unet2.py exactly (including the south/north
    aliasing of the original: BOTH vertical pads come from the FIRST rows,
    flipped and rolled by 180 along the last axis).  x is NCHW."""
    top = jnp.flip(x[:, :, :size, :], axis=-2)
    rolled = jnp.roll(top, 180, axis=-1)
    x = jnp.concatenate([rolled, x, rolled], axis=-2)
    east = x[..., :size]
    west = x[..., -size:]
    x = jnp.concatenate([west, x, east], axis=-1)
    return x


def _conv_bn_relu_kernel(z_ref, w_ref, b_ref, o_ref, x_sc, *,
                         h_out, w_out, c_in, b_blk):
    """One block of `b_blk` images per grid step.

    z_ref : (b_blk, 3*C, L)     bf16  merged stride-2 column planes; channel
                                      group kw*C:(kw+1)*C = kernel-column kw
    w_ref : (C_out, 9*C)        bf16  BN-scaled weights, K ordered (kw, kh, c)
    b_ref : (C_out, 1)          f32   folded conv-bias + BN shift
    o_ref : (b_blk, C_out, TM)        output block (lane-dense, NCHW order)
    x_sc  : (9*C, b_blk*TM)     bf16  VMEM scratch: assembled patch matrix
    """
    tm = h_out * w_out

    # 1) Assemble the patch matrix once with static slices (this is the only
    #    place the misaligned kh*w_out lane offsets are paid).
    for b in range(b_blk):
        zb = z_ref[b]                                         # (3*C, L)
        for kw in range(3):
            plane = zb[kw * c_in:(kw + 1) * c_in, :]          # (C, L)
            for kh in range(3):
                row = (kw * 3 + kh) * c_in
                x_sc[row:row + c_in, b * tm:(b + 1) * tm] = (
                    plane[:, kh * w_out:kh * w_out + tm])

    # 2) Single fused MXU contraction over K = 9*C.
    acc = jnp.dot(w_ref[...], x_sc[...],
                  preferred_element_type=jnp.float32)         # (C_out, b*TM)

    # 3) Epilogue: folded bias + ReLU, then lane-aligned per-image stores
    #    (lane offsets b*TM are multiples of TM; TM is a multiple of 128 here).
    y = jnp.maximum(acc + b_ref[...], 0.0)
    for b in range(b_blk):
        o_ref[b] = y[:, b * tm:(b + 1) * tm].astype(o_ref.dtype)


def initial_conv_forward(x, weight, bias, gamma, beta, run_mean, run_var,
                         eps=1e-5, out_dtype=jnp.bfloat16):
    """x: (N, C_in, H, W) f32.  weight: (C_out, C_in, 3, 3).  Returns NCHW."""
    N, C, H, W = x.shape
    C_out = weight.shape[0]
    H_out = H
    W_out = (W + 1) // 2
    Hp = H + 2
    L = Hp * W_out
    TM = H_out * W_out

    xp = _torch_style_pad(x, 1)                               # (N, C, H+2, W+2)

    # Merged stride-2 column planes: one bf16 array (N, 3*C, L).  Only ~1.5x
    # the input bytes in HBM (no 9x im2col), one DMA stream per step.
    planes = []
    for kw in range(3):
        zk = jax.lax.slice(xp, (0, 0, 0, kw),
                           (N, C, Hp, kw + 2 * (W_out - 1) + 1),
                           (1, 1, 1, 2))                      # (N, C, Hp, W_out)
        planes.append(zk.reshape(N, C, L))
    z = jnp.concatenate(planes, axis=1).astype(jnp.bfloat16)  # (N, 3*C, L)

    # Fold eval-mode BN scale into the conv weights; conv bias + BN shift into
    # a single per-channel bias column.
    inv_std = 1.0 / jnp.sqrt(run_var + eps)
    scale = gamma * inv_std                                   # (C_out,)
    bias_eff = (bias - run_mean) * scale + beta               # (C_out,)
    w_scaled = weight * scale[:, None, None, None]            # (C_out, C, 3, 3)
    # K ordering (kw, kh, c) to match the scratch assembly in the kernel.
    w_mat = jnp.transpose(w_scaled, (0, 3, 2, 1)).reshape(C_out, 9 * C)
    w_mat = w_mat.astype(jnp.bfloat16)
    bias_col = bias_eff.reshape(C_out, 1).astype(jnp.float32)

    # Block several images per grid step (target ~1024 output lanes/step).
    b_blk = max(1, min(N, max(1, 1024 // TM)))
    while N % b_blk:
        b_blk -= 1
    nb = N // b_blk

    kernel = functools.partial(_conv_bn_relu_kernel, h_out=H_out, w_out=W_out,
                               c_in=C, b_blk=b_blk)

    out_size = jnp.dtype(out_dtype).itemsize
    flops = 2 * N * TM * (9 * C) * C_out
    bytes_accessed = (N * 3 * C * L * 2 + C_out * 9 * C * 2 + C_out * 4
                      + N * C_out * TM * out_size)

    # VMEM budget: double-buffered in/out blocks + weights + bias + scratch.
    vmem_needed = (2 * (b_blk * 3 * C * L * 2 + b_blk * C_out * TM * out_size)
                   + C_out * 9 * C * 2 + C_out * 4
                   + 9 * C * b_blk * TM * 2 + (2 << 20))
    cp_kwargs = dict(dimension_semantics=("parallel",))
    if vmem_needed > (16 << 20):
        # TODO(synk): at production resolutions add a spatial M-tile grid axis
        # instead of only raising the limit (v7x has just 64 MiB VMEM).
        cp_kwargs["vmem_limit_bytes"] = int(min(vmem_needed, 48 << 20))

    out = pl.pallas_call(
        kernel,
        out_shape=jax.ShapeDtypeStruct((N, C_out, TM), out_dtype),
        grid=(nb,),
        in_specs=[
            pl.BlockSpec((b_blk, 3 * C, L), lambda n: (n, 0, 0)),
            pl.BlockSpec((C_out, 9 * C), lambda n: (0, 0)),
            pl.BlockSpec((C_out, 1), lambda n: (0, 0)),
        ],
        out_specs=pl.BlockSpec((b_blk, C_out, TM), lambda n: (n, 0, 0)),
        scratch_shapes=[pltpu.VMEM((9 * C, b_blk * TM), jnp.bfloat16)],
        compiler_params=pltpu.CompilerParams(**cp_kwargs),
        cost_estimate=pl.CostEstimate(flops=flops, transcendentals=0,
                                      bytes_accessed=bytes_accessed),
    )(z, w_mat, bias_col)

    # Output is already channel-major per image -> free reshape to NCHW.
    return out.reshape(N, C_out, H_out, W_out)


def reference_forward(x, weight, bias, gamma, beta, run_mean, run_var, eps=1e-5):
    xp = _torch_style_pad(x, 1)
    y = jax.lax.conv_general_dilated(
        xp, weight, window_strides=(1, 2), padding='VALID',
        dimension_numbers=('NCHW', 'OIHW', 'NCHW'))
    y = y + bias.reshape(1, -1, 1, 1)
    inv_std = 1.0 / jnp.sqrt(run_var + eps)
    y = ((y - run_mean.reshape(1, -1, 1, 1)) *
         (gamma * inv_std).reshape(1, -1, 1, 1) + beta.reshape(1, -1, 1, 1))
    return jnp.maximum(y, 0.0)


if __name__ == "__main__":
    # Small shapes consistent with the module.
    N, C_in, H, W = 2, 4, 16, 16
    C_out = 32

    key = jax.random.PRNGKey(0)
    k_x, k_w, k_b, k_g, k_be, k_m, k_v = jax.random.split(key, 7)

    x = jax.random.normal(k_x, (N, C_in, H, W), jnp.float32)
    weight = 0.1 * jax.random.normal(k_w, (C_out, C_in, 3, 3), jnp.float32)
    bias = 0.1 * jax.random.normal(k_b, (C_out,), jnp.float32)
    gamma = 1.0 + 0.1 * jax.random.normal(k_g, (C_out,), jnp.float32)
    beta = 0.1 * jax.random.normal(k_be, (C_out,), jnp.float32)
    run_mean = 0.1 * jax.random.normal(k_m, (C_out,), jnp.float32)
    run_var = jax.random.uniform(k_v, (C_out,), jnp.float32, 0.5, 1.5)
    # TODO(synk): train-mode BatchNorm batch statistics not implemented
    # (eval-mode running-stats semantics folded into the conv weights).

    fwd = jax.jit(initial_conv_forward)
    out = jax.block_until_ready(
        fwd(x, weight, bias, gamma, beta, run_mean, run_var))

    ref = jax.block_until_ready(
        reference_forward(x, weight, bias, gamma, beta, run_mean, run_var))

    assert out.shape == (N, C_out, H, (W + 1) // 2), out.shape
    # bf16 operands + bf16 output: intentional inference-precision trade-off.
    np.testing.assert_allclose(np.asarray(out, dtype=np.float32),
                               np.asarray(ref), rtol=3e-2, atol=3e-2)
    print("KERNEL_OK")
</pallas_src>

<mosaic_0001>
module attributes {stable_mosaic.version = 11 : i64} {
  func.func @_conv_bn_relu_kernel(%arg0: i32, %arg1: memref<2x12x144xbf16, #tpu.memory_space<vmem>>, %arg2: memref<32x36xbf16, #tpu.memory_space<vmem>>, %arg3: memref<32x1xf32, #tpu.memory_space<vmem>>, %arg4: memref<2x32x128xbf16, #tpu.memory_space<vmem>>, %arg5: memref<36x256xbf16, #tpu.memory_space<vmem>>) attributes {dimension_semantics = [#tpu.dimension_semantics<parallel>], iteration_bounds = array<i64: 1>, scalar_prefetch = 0 : i64, scratch_operands = 1 : i64, tpu.core_type = #tpu.core_type<tc>, window_params = [{transform_indices = @transform_0, window_bounds = array<i64: 2, 12, 144>}, {pipeline_mode = #tpu.pipeline_mode<synchronous>, transform_indices = @transform_1, window_bounds = array<i64: 32, 36>}, {pipeline_mode = #tpu.pipeline_mode<synchronous>, transform_indices = @transform_2, window_bounds = array<i64: 32, 1>}, {transform_indices = @transform_3, window_bounds = array<i64: 2, 32, 128>}]} {
    %c0 = arith.constant 0 : index
    %c0_0 = arith.constant 0 : index
    %c0_1 = arith.constant 0 : index
    %0 = vector.load %arg1[%c0, %c0_0, %c0_1] : memref<2x12x144xbf16, #tpu.memory_space<vmem>>, vector<1x12x144xbf16>
    %1 = vector.shape_cast %0 : vector<1x12x144xbf16> to vector<12x144xbf16>
    %2 = vector.extract_strided_slice %1 {offsets = [0, 0], sizes = [4, 144], strides = [1, 1]} : vector<12x144xbf16> to vector<4x144xbf16>
    %3 = vector.extract_strided_slice %2 {offsets = [0, 0], sizes = [4, 128], strides = [1, 1]} : vector<4x144xbf16> to vector<4x128xbf16>
    %c0_2 = arith.constant 0 : index
    %c0_3 = arith.constant 0 : index
    %4 = vector.load %arg5[%c0_2, %c0_3] : memref<36x256xbf16, #tpu.memory_space<vmem>>, vector<4x128xbf16>
    tpu.vector_store %arg5[%c0_2, %c0_3], %3 {strides = array<i32>} : memref<36x256xbf16, #tpu.memory_space<vmem>>, vector<4x128xbf16>,
    %5 = vector.extract_strided_slice %2 {offsets = [0, 8], sizes = [4, 128], strides = [1, 1]} : vector<4x144xbf16> to vector<4x128xbf16>
    %c4 = arith.constant 4 : index
    %c0_4 = arith.constant 0 : index
    %6 = vector.load %arg5[%c4, %c0_4] : memref<36x256xbf16, #tpu.memory_space<vmem>>, vector<4x128xbf16>
    tpu.vector_store %arg5[%c4, %c0_4], %5 {strides = array<i32>} : memref<36x256xbf16, #tpu.memory_space<vmem>>, vector<4x128xbf16>,
    %7 = vector.extract_strided_slice %2 {offsets = [0, 16], sizes = [4, 128], strides = [1, 1]} : vector<4x144xbf16> to vector<4x128xbf16>
    %c8 = arith.constant 8 : index
    %c0_5 = arith.constant 0 : index
    %8 = vector.load %arg5[%c8, %c0_5] : memref<36x256xbf16, #tpu.memory_space<vmem>>, vector<4x128xbf16>
    tpu.vector_store %arg5[%c8, %c0_5], %7 {strides = array<i32>} : memref<36x256xbf16, #tpu.memory_space<vmem>>, vector<4x128xbf16>,
    %9 = vector.extract_strided_slice %1 {offsets = [4, 0], sizes = [4, 144], strides = [1, 1]} : vector<12x144xbf16> to vector<4x144xbf16>
    %10 = vector.extract_strided_slice %9 {offsets = [0, 0], sizes = [4, 128], strides = [1, 1]} : vector<4x144xbf16> to vector<4x128xbf16>
    %c12 = arith.constant 12 : index
    %c0_6 = arith.constant 0 : index
    %11 = vector.load %arg5[%c12, %c0_6] : memref<36x256xbf16, #tpu.memory_space<vmem>>, vector<4x128xbf16>
    tpu.vector_store %arg5[%c12, %c0_6], %10 {strides = array<i32>} : memref<36x256xbf16, #tpu.memory_space<vmem>>, vector<4x128xbf16>,
    %12 = vector.extract_strided_slice %9 {offsets = [0, 8], sizes = [4, 128], strides = [1, 1]} : vector<4x144xbf16> to vector<4x128xbf16>
    %c16 = arith.constant 16 : index
    %c0_7 = arith.constant 0 : index
    %13 = vector.load %arg5[%c16, %c0_7] : memref<36x256xbf16, #tpu.memory_space<vmem>>, vector<4x128xbf16>
    tpu.vector_store %arg5[%c16, %c0_7], %12 {strides = array<i32>} : memref<36x256xbf16, #tpu.memory_space<vmem>>, vector<4x128xbf16>,
    %14 = vector.extract_strided_slice %9 {offsets = [0, 16], sizes = [4, 128], strides = [1, 1]} : vector<4x144xbf16> to vector<4x128xbf16>
    %c20 = arith.constant 20 : index
    %c0_8 = arith.constant 0 : index
    %15 = vector.load %arg5[%c20, %c0_8] : memref<36x256xbf16, #tpu.memory_space<vmem>>, vector<4x128xbf16>
    tpu.vector_store %arg5[%c20, %c0_8], %14 {strides = array<i32>} : memref<36x256xbf16, #tpu.memory_space<vmem>>, vector<4x128xbf16>,
    %16 = vector.extract_strided_slice %1 {offsets = [8, 0], sizes = [4, 144], strides = [1, 1]} : vector<12x144xbf16> to vector<4x144xbf16>
    %17 = vector.extract_strided_slice %16 {offsets = [0, 0], sizes = [4, 128], strides = [1, 1]} : vector<4x144xbf16> to vector<4x128xbf16>
    %c24 = arith.constant 24 : index
    %c0_9 = arith.constant 0 : index
    %18 = vector.load %arg5[%c24, %c0_9] : memref<36x256xbf16, #tpu.memory_space<vmem>>, vector<4x128xbf16>
    tpu.vector_store %arg5[%c24, %c0_9], %17 {strides = array<i32>} : memref<36x256xbf16, #tpu.memory_space<vmem>>, vector<4x128xbf16>,
    %19 = vector.extract_strided_slice %16 {offsets = [0, 8], sizes = [4, 128], strides = [1, 1]} : vector<4x144xbf16> to vector<4x128xbf16>
    %c28 = arith.constant 28 : index
    %c0_10 = arith.constant 0 : index
    %20 = vector.load %arg5[%c28, %c0_10] : memref<36x256xbf16, #tpu.memory_space<vmem>>, vector<4x128xbf16>
    tpu.vector_store %arg5[%c28, %c0_10], %19 {strides = array<i32>} : memref<36x256xbf16, #tpu.memory_space<vmem>>, vector<4x128xbf16>,
    %21 = vector.extract_strided_slice %16 {offsets = [0, 16], sizes = [4, 128], strides = [1, 1]} : vector<4x144xbf16> to vector<4x128xbf16>
    %c32 = arith.constant 32 : index
    %c0_11 = arith.constant 0 : index
    %22 = vector.load %arg5[%c32, %c0_11] : memref<36x256xbf16, #tpu.memory_space<vmem>>, vector<4x128xbf16>
    tpu.vector_store %arg5[%c32, %c0_11], %21 {strides = array<i32>} : memref<36x256xbf16, #tpu.memory_space<vmem>>, vector<4x128xbf16>,
    %c1 = arith.constant 1 : index
    %c0_12 = arith.constant 0 : index
    %c0_13 = arith.constant 0 : index
    %23 = vector.load %arg1[%c1, %c0_12, %c0_13] : memref<2x12x144xbf16, #tpu.memory_space<vmem>>, vector<1x12x144xbf16>
    %24 = vector.shape_cast %23 : vector<1x12x144xbf16> to vector<12x144xbf16>
    %25 = vector.extract_strided_slice %24 {offsets = [0, 0], sizes = [4, 144], strides = [1, 1]} : vector<12x144xbf16> to vector<4x144xbf16>
    %26 = vector.extract_strided_slice %25 {offsets = [0, 0], sizes = [4, 128], strides = [1, 1]} : vector<4x144xbf16> to vector<4x128xbf16>
    %c0_14 = arith.constant 0 : index
    %c128 = arith.constant 128 : index
    %27 = vector.load %arg5[%c0_14, %c128] : memref<36x256xbf16, #tpu.memory_space<vmem>>, vector<4x128xbf16>
    tpu.vector_store %arg5[%c0_14, %c128], %26 {strides = array<i32>} : memref<36x256xbf16, #tpu.memory_space<vmem>>, vector<4x128xbf16>,
    %28 = vector.extract_strided_slice %25 {offsets = [0, 8], sizes = [4, 128], strides = [1, 1]} : vector<4x144xbf16> to vector<4x128xbf16>
    %c4_15 = arith.constant 4 : index
    %c128_16 = arith.constant 128 : index
    %29 = vector.load %arg5[%c4_15, %c128_16] : memref<36x256xbf16, #tpu.memory_space<vmem>>, vector<4x128xbf16>
    tpu.vector_store %arg5[%c4_15, %c128_16], %28 {strides = array<i32>} : memref<36x256xbf16, #tpu.memory_space<vmem>>, vector<4x128xbf16>,
    %30 = vector.extract_strided_slice %25 {offsets = [0, 16], sizes = [4, 128], strides = [1, 1]} : vector<4x144xbf16> to vector<4x128xbf16>
    %c8_17 = arith.constant 8 : index
    %c128_18 = arith.constant 128 : index
    %31 = vector.load %arg5[%c8_17, %c128_18] : memref<36x256xbf16, #tpu.memory_space<vmem>>, vector<4x128xbf16>
    tpu.vector_store %arg5[%c8_17, %c128_18], %30 {strides = array<i32>} : memref<36x256xbf16, #tpu.memory_space<vmem>>, vector<4x128xbf16>,
    %32 = vector.extract_strided_slice %24 {offsets = [4, 0], sizes = [4, 144], strides = [1, 1]} : vector<12x144xbf16> to vector<4x144xbf16>
    %33 = vector.extract_strided_slice %32 {offsets = [0, 0], sizes = [4, 128], strides = [1, 1]} : vector<4x144xbf16> to vector<4x128xbf16>
    %c12_19 = arith.constant 12 : index
    %c128_20 = arith.constant 128 : index
    %34 = vector.load %arg5[%c12_19, %c128_20] : memref<36x256xbf16, #tpu.memory_space<vmem>>, vector<4x128xbf16>
    tpu.vector_store %arg5[%c12_19, %c128_20], %33 {strides = array<i32>} : memref<36x256xbf16, #tpu.memory_space<vmem>>, vector<4x128xbf16>,
    %35 = vector.extract_strided_slice %32 {offsets = [0, 8], sizes = [4, 128], strides = [1, 1]} : vector<4x144xbf16> to vector<4x128xbf16>
    %c16_21 = arith.constant 16 : index
    %c128_22 = arith.constant 128 : index
    %36 = vector.load %arg5[%c16_21, %c128_22] : memref<36x256xbf16, #tpu.memory_space<vmem>>, vector<4x128xbf16>
    tpu.vector_store %arg5[%c16_21, %c128_22], %35 {strides = array<i32>} : memref<36x256xbf16, #tpu.memory_space<vmem>>, vector<4x128xbf16>,
    %37 = vector.extract_strided_slice %32 {offsets = [0, 16], sizes = [4, 128], strides = [1, 1]} : vector<4x144xbf16> to vector<4x128xbf16>
    %c20_23 = arith.constant 20 : index
    %c128_24 = arith.constant 128 : index
    %38 = vector.load %arg5[%c20_23, %c128_24] : memref<36x256xbf16, #tpu.memory_space<vmem>>, vector<4x128xbf16>
    tpu.vector_store %arg5[%c20_23, %c128_24], %37 {strides = array<i32>} : memref<36x256xbf16, #tpu.memory_space<vmem>>, vector<4x128xbf16>,
    %39 = vector.extract_strided_slice %24 {offsets = [8, 0], sizes = [4, 144], strides = [1, 1]} : vector<12x144xbf16> to vector<4x144xbf16>
    %40 = vector.extract_strided_slice %39 {offsets = [0, 0], sizes = [4, 128], strides = [1, 1]} : vector<4x144xbf16> to vector<4x128xbf16>
    %c24_25 = arith.constant 24 : index
    %c128_26 = arith.constant 128 : index
    %41 = vector.load %arg5[%c24_25, %c128_26] : memref<36x256xbf16, #tpu.memory_space<vmem>>, vector<4x128xbf16>
    tpu.vector_store %arg5[%c24_25, %c128_26], %40 {strides = array<i32>} : memref<36x256xbf16, #tpu.memory_space<vmem>>, vector<4x128xbf16>,
    %42 = vector.extract_strided_slice %39 {offsets = [0, 8], sizes = [4, 128], strides = [1, 1]} : vector<4x144xbf16> to vector<4x128xbf16>
    %c28_27 = arith.constant 28 : index
    %c128_28 = arith.constant 128 : index
    %43 = vector.load %arg5[%c28_27, %c128_28] : memref<36x256xbf16, #tpu.memory_space<vmem>>, vector<4x128xbf16>
    tpu.vector_store %arg5[%c28_27, %c128_28], %42 {strides = array<i32>} : memref<36x256xbf16, #tpu.memory_space<vmem>>, vector<4x128xbf16>,
    %44 = vector.extract_strided_slice %39 {offsets = [0, 16], sizes = [4, 128], strides = [1, 1]} : vector<4x144xbf16> to vector<4x128xbf16>
    %c32_29 = arith.constant 32 : index
    %c128_30 = arith.constant 128 : index
    %45 = vector.load %arg5[%c32_29, %c128_30] : memref<36x256xbf16, #tpu.memory_space<vmem>>, vector<4x128xbf16>
    tpu.vector_store %arg5[%c32_29, %c128_30], %44 {strides = array<i32>} : memref<36x256xbf16, #tpu.memory_space<vmem>>, vector<4x128xbf16>,
    %c0_31 = arith.constant 0 : index
    %c0_32 = arith.constant 0 : index
    %46 = vector.load %arg2[%c0_31, %c0_32] : memref<32x36xbf16, #tpu.memory_space<vmem>>, vector<32x36xbf16>
    %c0_33 = arith.constant 0 : index
    %c0_34 = arith.constant 0 : index
    %47 = vector.load %arg5[%c0_33, %c0_34] : memref<36x256xbf16, #tpu.memory_space<vmem>>, vector<36x256xbf16>
    %cst = arith.constant dense<0.000000e+00> : vector<32x256xf32>
    %48 = tpu.matmul %46, %47, %cst {dimension_numbers = #tpu.dot_dimension_numbers<[1], [0], [0], [1], [0, 0, 1, 1], [], []>} : vector<32x36xbf16>, vector<36x256xbf16>, vector<32x256xf32> -> vector<32x256xf32>
    %c0_35 = arith.constant 0 : index
    %c0_36 = arith.constant 0 : index
    %49 = vector.load %arg3[%c0_35, %c0_36] : memref<32x1xf32, #tpu.memory_space<vmem>>, vector<32x1xf32>
    %50 = vector.broadcast %49 : vector<32x1xf32> to vector<32x256xf32>
    %51 = arith.addf %48, %50 : vector<32x256xf32>
    %cst_37 = arith.constant 0.000000e+00 : f32
    %52 = vector.broadcast %cst_37 : f32 to vector<32x256xf32>
    %53 = arith.maximumf %51, %52 : vector<32x256xf32>
    %54 = vector.extract_strided_slice %53 {offsets = [0, 0], sizes = [32, 128], strides = [1, 1]} : vector<32x256xf32> to vector<32x128xf32>
    %55 = arith.truncf %54 : vector<32x128xf32> to vector<32x128xbf16>
    %c0_38 = arith.constant 0 : index
    %c0_39 = arith.constant 0 : index
    %c0_40 = arith.constant 0 : index
    %56 = vector.load %arg4[%c0_38, %c0_39, %c0_40] : memref<2x32x128xbf16, #tpu.memory_space<vmem>>, vector<1x32x128xbf16>
    %57 = vector.shape_cast %56 : vector<1x32x128xbf16> to vector<32x128xbf16>
    %58 = vector.shape_cast %55 : vector<32x128xbf16> to vector<1x32x128xbf16>
    tpu.vector_store %arg4[%c0_38, %c0_39, %c0_40], %58 {strides = array<i32>} : memref<2x32x128xbf16, #tpu.memory_space<vmem>>, vector<1x32x128xbf16>,
    %59 = vector.extract_strided_slice %53 {offsets = [0, 128], sizes = [32, 128], strides = [1, 1]} : vector<32x256xf32> to vector<32x128xf32>
    %60 = arith.truncf %59 : vector<32x128xf32> to vector<32x128xbf16>
    %c1_41 = arith.constant 1 : index
    %c0_42 = arith.constant 0 : index
    %c0_43 = arith.constant 0 : index
    %61 = vector.load %arg4[%c1_41, %c0_42, %c0_43] : memref<2x32x128xbf16, #tpu.memory_space<vmem>>, vector<1x32x128xbf16>
    %62 = vector.shape_cast %61 : vector<1x32x128xbf16> to vector<32x128xbf16>
    %63 = vector.shape_cast %60 : vector<32x128xbf16> to vector<1x32x128xbf16>
    tpu.vector_store %arg4[%c1_41, %c0_42, %c0_43], %63 {strides = array<i32>} : memref<2x32x128xbf16, #tpu.memory_space<vmem>>, vector<1x32x128xbf16>,
    return
  }
  func.func @transform_0(%arg0: i32) -> (i32, i32, i32) {
    %c0_i32 = arith.constant 0 : i32
    %c0_i32_0 = arith.constant 0 : i32
    %c0_i32_1 = arith.constant 0 : i32
    return %arg0, %c0_i32, %c0_i32_0 : i32, i32, i32
  }
  func.func @transform_1(%arg0: i32) -> (i32, i32) {
    %c0_i32 = arith.constant 0 : i32
    %c0_i32_0 = arith.constant 0 : i32
    %c0_i32_1 = arith.constant 0 : i32
    return %c0_i32, %c0_i32_0 : i32, i32
  }
  func.func @transform_2(%arg0: i32) -> (i32, i32) {
    %c0_i32 = arith.constant 0 : i32
    %c0_i32_0 = arith.constant 0 : i32
    %c0_i32_1 = arith.constant 0 : i32
    return %c0_i32, %c0_i32_0 : i32, i32
  }
  func.func @transform_3(%arg0: i32) -> (i32, i32, i32) {
    %c0_i32 = arith.constant 0 : i32
    %c0_i32_0 = arith.constant 0 : i32
    %c0_i32_1 = arith.constant 0 : i32
    return %arg0, %c0_i32, %c0_i32_0 : i32, i32, i32
  }
}

</mosaic_0001>

<bundles_post_ra>
// kernel: initial_conv_forward.1
= control target key start
LH: loop header
LB: loop body
LE: loop exit
PB: predicated region body
PF: predicated region fallthrough
CT: control target
= control target key end

     0   :  { %s365_s18 = smov 112   ;;  %s366_s21 = smov 120   ;;  %v367_v10 = vmov 0   ;;  %vm30_vm0 = vcmask 916480   ;;  %vm23_vm1 = vcmask 982016   ;;  %vm175_vm2 = vcmask 1041408   ;;  %s440_s0 = inlined_call_operand.vmem [shape: bf16[2,12,144], index: 0, kind: input, shape index: {}]   ;;  %s441_s1 = inlined_call_operand.vmem [shape: bf16[32,36], index: 1, kind: input, shape index: {}]   ;;  %s442_s2 = inlined_call_operand.vmem [shape: f32[32,1], index: 2, kind: input, shape index: {}]   ;;  %s443_s3 = inlined_call_operand.vmem [shape: bf16[2,32,128], index: 3, kind: output, shape index: {}]  }
   0x1   :  { %v16_v0 = vld [vmem:[%s440_s0 + $0x8] sm:$0x33]  ;;  %v15_v1 = vld [vmem:[%s440_s0] sm:$0xff]  ;;  %v289_v2 = vld [vmem:[%s440_s0 + $0x18] sm:$0x33]  ;;  %214 = vmatprep.mubr.bf16.mxu0 %v367_v10  ;;  %224 = vmatprep.mubr.bf16.mxu1 %v367_v10  ;;  %vm168_vm3 = vcmask 293888  }
   0x2   :  { %52 = vrot.lane.b32.xlu0 %v16_v0, %s365_s18  ;;  %43 = vst [vmem:[#allocation2 + $0x18] sm:$0x3] %v16_v0  ;;  %27 = vrot.lane.b32.xlu1 %v15_v1, %s365_s18  ;;  %17 = vst [vmem:[#allocation2] sm:$0x3] %v15_v1  ;;  %v19_v3 = vrot.slane %v15_v1, 6  ;;  %v288_v4 = vld [vmem:[%s440_s0 + $0x10] sm:$0xff] }
   0x3   :  { %34 = vst [vmem:[#allocation2 + $0x8] sm:$0xc] %v15_v1  ;;  %85 = vst [vmem:[#allocation2 + $0x1c] sm:$0x3] %v289_v2  ;;  %v45_v6 = vrot.slane %v16_v0, 6  ;;  %v63_v7 = vrot.slane %v288_v4, 6  ;;  %354 = vset.pattern.permute.xlu1 %v367_v10  ;;  %353 = vset.pattern.permute.xlu0 %v367_v10 }
   0x4   :  { %61 = vst [vmem:[#allocation2 + $0x4] sm:$0x3] %v288_v4  ;;  %76 = vst [vmem:[#allocation2 + $0xc] sm:$0xc] %v288_v4  ;;  %v35_v5 = vrot.slane %v19_v3, 4  ;;  %v87_v9 = vrot.slane %v289_v2, 6 }
   0x5   :  { %v77_v8 = vrot.slane %v63_v7, 4  ;;  %v110_v11 = vld [vmem:[%s442_s2 + $0x8] sm:$0xff]  ;;  %v109_v12 = vld [vmem:[%s442_s2] sm:$0xff]  ;;  %v111_v13 = vld [vmem:[%s442_s2 + $0x10] sm:$0xff] }
   0x6   :  { %94 = vrot.lane.b32.xlu0 %v289_v2, %s365_s18  ;;  %36 = vrot.lane.b32.xlu1 %v35_v5, %s366_s21  ;;  %v112_v14 = vld [vmem:[%s442_s2 + $0x18] sm:$0xff]  ;;  %v363_v53 = vld [vmem:[%s441_s1] sm:$0xff]  }
   0x7   :  { %v364_v54 = vld [vmem:[%s441_s1 + $0x8] sm:$0xff]  }
   0xa   :  { %46 = vrot.lane.b32.xlu0 %v45_v6, %s366_s21  ;;  %70 = vrot.lane.b32.xlu1 %v288_v4, %s365_s18 }
   0xe   :  { %78 = vrot.lane.b32.xlu0 %v77_v8, %s366_s21  ;;  %88 = vrot.lane.b32.xlu1 %v87_v9, %s366_s21 }
  0x12   :  { %20 = vrot.lane.b32.xlu0 %v19_v3, %s366_s21  ;;  %64 = vrot.lane.b32.xlu1 %v63_v7, %s366_s21 }
  0x16   :  { %120 = vperm.xlu1 %354, %v110_v11   ;;  %115 = vperm.xlu0 %353, %v109_v12  }
  0x1a   :  { %125 = vperm.xlu1 %354, %v111_v13   ;;  %130 = vperm.xlu0 %353, %v112_v14  }
  0x74   :  { %v53_v15 = vpop.permute.xlu0 %52  ;;  %v28_v16 = vpop.permute.xlu1 %27 }
  0x75   :  { %v54_v17 = vrot.slane %v53_v15, 4  ;;  %v29_v18 = vrot.slane %v28_v16, 4 }
  0x77   :  { %v55_v19 = vsel %vm30_vm0, %v53_v15, %v54_v17  ;;  %v31_v20 = vsel %vm30_vm0, %v28_v16, %v29_v18 }
  0x78   :  { %57 = vst [vmem:[#allocation2 + $0x20] sm:$0x3] %v55_v19  ;;  %33 = vst [vmem:[#allocation2 + $0x8] sm:$0x3] %v31_v20  ;;  %v95_v21 = vpop.permute.xlu0 %94  ;;  %v37_v22 = vpop.permute.xlu1 %36 }
  0x79   :  { %42 = vst [vmem:[#allocation2 + $0x10] sm:$0xc] %v31_v20  ;;  %v96_v23 = vrot.slane %v95_v21, 4  ;;  %v38_v24 = vrot.slane %v37_v22, 4 }
  0x7b   :  { %v97_v25 = vsel %vm30_vm0, %v95_v21, %v96_v23  ;;  %v39_v26 = vsel %vm23_vm1, %v37_v22, %v38_v24 }
  0x7c   :  { %99 = vst [vmem:[#allocation2 + $0x24] sm:$0x3] %v97_v25  ;;  %41 = vst [vmem:[#allocation2 + $0x10] sm:$0x3] %v39_v26  ;;  %v47_v27 = vpop.permute.xlu0 %46  ;;  %v71_v28 = vpop.permute.xlu1 %70 }
  0x7d   :  { %v48_v29 = vrot.slane %v47_v27, 4  ;;  %v72_v30 = vrot.slane %v71_v28, 4 }
  0x7f   :  { %v49_v31 = vsel %vm23_vm1, %v47_v27, %v48_v29  ;;  %v73_v32 = vsel %vm30_vm0, %v71_v28, %v72_v30 }
  0x80   :  { %51 = vst [vmem:[#allocation2 + $0x18] sm:$0xc] %v49_v31  ;;  %75 = vst [vmem:[#allocation2 + $0xc] sm:$0x3] %v73_v32  ;;  %v79_v33 = vpop.permute.xlu0 %78  ;;  %v89_v34 = vpop.permute.xlu1 %88 }
  0x81   :  { %84 = vst [vmem:[#allocation2 + $0x14] sm:$0xc] %v73_v32  ;;  %v80_v35 = vrot.slane %v79_v33, 4  ;;  %v90_v36 = vrot.slane %v89_v34, 4 }
  0x83   :  { %v81_v37 = vsel %vm23_vm1, %v79_v33, %v80_v35  ;;  %v91_v38 = vsel %vm23_vm1, %v89_v34, %v90_v36  ;;  %v108_v39 = vld [vmem:[#allocation2 + $0x20] sm:$0x33] }
  0x84   :  { %83 = vst [vmem:[#allocation2 + $0x14] sm:$0x3] %v81_v37  ;;  %93 = vst [vmem:[#allocation2 + $0x1c] sm:$0xc] %v91_v38  ;;  %v21_v40 = vpop.permute.xlu0 %20  ;;  %v65_v41 = vpop.permute.xlu1 %64  ;;  %v297_v42 = vcombine.high %v108_v39, %v108_v39  ;;  %v296_v43 = vcombine.low %v108_v39, %v108_v39 }
  0x85   :  { %v22_v44 = vrot.slane %v21_v40, 4  ;;  %v66_v45 = vrot.slane %v65_v41, 4 }
  0x86   :  { %298 = vmatprep.subr.msk.bf16.mxu0 %vm175_vm2, %v297_v42  ;;  %344 = vmatprep.subr.msk.bf16.mxu1 %vm175_vm2, %v297_v42  ;;  %v177_v46 = vsel %vm175_vm2, %v296_v43, 0 }
  0x87   :  { %v24_v47 = vsel %vm23_vm1, %v21_v40, %v22_v44  ;;  %v67_v48 = vsel %vm23_vm1, %v65_v41, %v66_v45  ;;  %193 = vmatpush1.bf16.msra.mxu0 %v177_v46  ;;  %347 = vmatpush1.bf16.msra.mxu1 %v177_v46  ;;  %v359_v50 = vld [vmem:[#allocation2 + $0x10] ss:$8 sps:$4 sm:$0xff]  }
  0x88   :  { %26 = vst [vmem:[#allocation2] sm:$0xc] %v24_v47  ;;  %69 = vst [vmem:[#allocation2 + $0x4] sm:$0xc] %v67_v48 }
  0x8b   :  { %v357_v49 = vld [vmem:[#allocation2 + $0x14] ss:$8 sps:$4 sm:$0xff]  }
  0x8c   :  { %194 = vmatprep.subr.bf16.mxu0 %v357_v49  ;;  %345 = vmatprep.subr.bf16.mxu1 %v357_v49 }
  0x8d   :  { %195 = vmatpush1.bf16.msra.mxu0 %v359_v50  ;;  %348 = vmatpush1.bf16.msra.mxu1 %v359_v50 }
  0x8f   :  { %v360_v51 = vld [vmem:[#allocation2 + $0x4] ss:$8 sps:$4 sm:$0xff]   ;;  %v362_v52 = vld [vmem:[#allocation2] ss:$8 sps:$4 sm:$0xff]  }
  0x90   :  { %196 = vmatprep.subr.bf16.mxu0 %v360_v51  ;;  %346 = vmatprep.subr.bf16.mxu1 %v360_v51 }
  0x91   :  { %197 = vmatpush1.bf16.msra.mxu0 %v362_v52  ;;  %349 = vmatpush1.bf16.msra.mxu1 %v362_v52  ;;  %v121_v55 = vpop.permute.xlu1 %120  ;;  %v116_v56 = vpop.permute.xlu0 %115 }
  0x94   :  { %299 = vmatmul.mubr.msk.bf16.vlgmr.msra.gmra.mxu0 %vm168_vm3, %v363_v53  ;;  %300 = vmatmul.mubr.msk.bf16.vlgmr.msra.gmra.mxu1 %vm168_vm3, %v364_v54 }
  0x95   :  { %v126_v57 = vpop.permute.xlu1 %125  ;;  %v131_v0 = vpop.permute.xlu0 %130 }
 0x154   :  { %v216_v58 = vpop.f32.mrf.mxu0  ;;  %v226_v59 = vpop.f32.mrf.mxu1 }
 0x155   :  { %v217_v60 = vadd.f32 %v216_v58, %v116_v56  ;;  %v227_v61 = vadd.f32 %v226_v59, %v126_v57 }
 0x156   :  { %v218_v62 = vpop.f32.mrf.mxu0  ;;  %v228_v63 = vpop.f32.mrf.mxu1 }
 0x157   :  { %v219_v1 = vadd.f32 %v218_v62, %v116_v56  ;;  %v229_v2 = vadd.f32 %v228_v63, %v126_v57  ;;  %v235_v7 = vmax.f32 %v217_v60, 0.0  ;;  %v239_v8 = vmax.f32 %v227_v61, 0.0 }
 0x158   :  { %v220_v3 = vpop.f32.mrf.mxu0  ;;  %v230_v4 = vpop.f32.mrf.mxu1 }
 0x159   :  { %v221_v5 = vadd.f32 %v220_v3, %v121_v55  ;;  %v231_v6 = vadd.f32 %v230_v4, %v131_v0  ;;  %v236_v15 = vmax.f32 %v219_v1, 0.0  ;;  %v240_v16 = vmax.f32 %v229_v2, 0.0 }
 0x15a   :  { %v222_v9 = vpop.f32.mrf.mxu0  ;;  %v232_v10 = vpop.f32.mrf.mxu1 }
 0x15b   :  { %v237_v11 = vmax.f32 %v221_v5, 0.0  ;;  %v241_v12 = vmax.f32 %v231_v6, 0.0  ;;  %v223_v13 = vadd.f32 %v222_v9, %v121_v55  ;;  %v233_v14 = vadd.f32 %v232_v10, %v131_v0 }
 0x15d   :  { %v324_v17 = vpack.c.bf16 %v237_v11, %v235_v7  ;;  %v329_v18 = vpack.c.bf16 %v241_v12, %v239_v8  ;;  %v238_v19 = vmax.f32 %v223_v13, 0.0  ;;  %v242_v20 = vmax.f32 %v233_v14, 0.0 }
 0x15f   :  { %325 = vst [vmem:[%s443_s3] sm:$0xff] %v324_v17   ;;  %341 = vst [vmem:[%s443_s3 + $0x8] sm:$0xff] %v329_v18   ;;  %v334_v21 = vpack.c.bf16 %v238_v19, %v236_v15  ;;  %v339_v22 = vpack.c.bf16 %v242_v20, %v240_v16 }
 0x161   :  { %342 = vst [vmem:[%s443_s3 + $0x10] sm:$0xff] %v334_v21   ;;  %343 = vst [vmem:[%s443_s3 + $0x18] sm:$0xff] %v339_v22  }

</bundles_post_ra>
